<compile_context>
chip_gen: v6e
topology: v6e:2x2x1
jax: 0.10.0
libtpu: 0.0.40
codegen_flags: <defaults>
</compile_context>

<pallas_src>
import jax
import jax.numpy as jnp
from jax.experimental import pallas as pl
from jax.experimental.pallas import tpu as pltpu


# ---------------------------------------------------------------------------
# Kernel
# ---------------------------------------------------------------------------
def _concat_kernel(xyz_ref, feat_ref, out_ref):
    # xyz_ref : (Bt, Cx, nt)      VMEM
    # feat_ref: (Bt, Cf, nt)      VMEM
    # out_ref : (Bt, Cx+Cf, nt)   VMEM  (lane-dense output slab)
    cx = xyz_ref.shape[1]
    out_ref[:, :cx, :] = xyz_ref[...].astype(out_ref.dtype)
    out_ref[:, cx:, :] = feat_ref[...].astype(out_ref.dtype)


# ---------------------------------------------------------------------------
# Tiling helpers
# ---------------------------------------------------------------------------
def _cdiv(a, b):
    return -(-a // b)


def _vmem_capacity_bytes():
    """Generation-aware VMEM capacity (falls back to the smallest, v7x)."""
    try:
        return int(pltpu.get_tpu_info().vmem_capacity_bytes)
    except Exception:  # pragma: no cover - defensive; assume v7x-sized VMEM
        return 64 << 20


def _pick_tiles(B, N, rows, itemsize):
    """Pick (Bt, nt) lane/batch tiles for the mem-bound concat.

    rows = total sublane rows (in + out) per batch element per lane column,
    i.e. Cx + Cf + C_out, so rows*itemsize*nt*Bt is the bytes of live blocks
    per grid step (before double-buffering).
    """
    vmem_cap = _vmem_capacity_bytes()
    live_budget = int(vmem_cap * 0.35)          # double-buffered live blocks
    step_budget = max(1 << 20, live_budget // 2)  # block bytes per grid step
    target_step_bytes = min(4 << 20, step_budget)  # amortize ~0.35us/step

    bytes_per_lane = max(1, rows * itemsize)    # per batch element, per lane

    # --- lane (N) tile: 128-aligned, balanced, capped by per-step budget ----
    nt_cap = max(128, (step_budget // bytes_per_lane) // 128 * 128)
    if nt_cap >= N:
        nt = N                                   # single full-extent lane tile
    else:
        k = _cdiv(N, nt_cap)                     # number of lane tiles
        nt = min(N, 128 * _cdiv(N, 128 * k))     # balanced, 128-aligned

    # --- batch tile: grow per-step bytes toward the target ------------------
    step_bytes_b1 = bytes_per_lane * nt
    bt = 1
    if step_bytes_b1 < target_step_bytes and B > 1:
        bt = min(B, max(1, target_step_bytes // step_bytes_b1))
        while bt > 1 and bt * step_bytes_b1 > step_budget:
            bt -= 1
        while bt > 1 and B % bt != 0:            # prefer balanced batch tiles
            bt -= 1

    # --- guarantee >= 2 grid steps so v7x megacore feeds both TCs -----------
    if _cdiv(B, bt) * _cdiv(N, nt) < 2:
        if B >= 2:
            bt = max(1, B // 2)
        elif N >= 256 and nt >= 256:
            nt = min(N, 128 * _cdiv(N, 256))     # ~2 balanced lane tiles

    step_bytes = bt * bytes_per_lane * nt
    return bt, nt, step_bytes, vmem_cap


# ---------------------------------------------------------------------------
# Public wrapper (mirrors GroupAll.forward; xyz / new_xyz* are ignored)
# ---------------------------------------------------------------------------
def group_all(xyz, xyz_embed, new_xyz, new_xyz_embed,
              features=None, new_features=None, use_xyz=True):
    del xyz, new_xyz, new_xyz_embed, new_features   # unused by GroupAll.forward

    # No-concat paths: the unsqueeze is free metadata -- no kernel, no copy.
    if features is None:
        return xyz_embed[:, :, None, :]
    if not use_xyz:
        return features[:, :, None, :]

    B, Cx, N = xyz_embed.shape
    Bf, Cf, Nf = features.shape
    assert (Bf, Nf) == (B, N), "xyz_embed / features batch or N mismatch"
    if features.dtype != xyz_embed.dtype:
        # torch.cat requires matching dtypes; silent promotion would also
        # double the output HBM write bytes.
        raise ValueError("GroupAll: xyz_embed and features must share a dtype")

    out_dtype = xyz_embed.dtype
    C_out = Cx + Cf
    itemsize = jnp.dtype(out_dtype).itemsize
    rows = Cx + Cf + C_out                        # in + out rows per batch elem

    bt, nt, step_bytes, vmem_cap = _pick_tiles(B, N, rows, itemsize)

    # Raise the scoped VMEM ceiling enough for the double-buffered blocks,
    # but never ask for more than the chip physically has (64 MiB on v7x).
    vmem_limit = int(min(vmem_cap * 0.9,
                         max(32 << 20, 2 * step_bytes + (8 << 20))))

    cost = pl.CostEstimate(flops=0, transcendentals=0,
                           bytes_accessed=int(2 * B * C_out * N * itemsize))

    out3 = pl.pallas_call(
        _concat_kernel,
        out_shape=jax.ShapeDtypeStruct((B, C_out, N), out_dtype),
        grid=(pl.cdiv(B, bt), pl.cdiv(N, nt)),
        in_specs=[
            pl.BlockSpec((bt, Cx, nt), lambda b, n: (b, 0, n)),
            pl.BlockSpec((bt, Cf, nt), lambda b, n: (b, 0, n)),
        ],
        out_specs=pl.BlockSpec((bt, C_out, nt), lambda b, n: (b, 0, n)),
        compiler_params=pltpu.CompilerParams(
            dimension_semantics=("parallel", "parallel"),
            vmem_limit_bytes=vmem_limit),
        cost_estimate=cost,
    )(xyz_embed, features)

    # Singleton "group" axis is free metadata; add it outside the kernel.
    return out3[:, :, None, :]


# ---------------------------------------------------------------------------
# Self-test
# ---------------------------------------------------------------------------
if __name__ == "__main__":
    key = jax.random.PRNGKey(0)
    k1, k2, k3, k4, k5 = jax.random.split(key, 5)

    # --- small shapes (single full-N lane tile) --------------------------
    B, N, Cx, Cf = 2, 16, 3, 4
    xyz = jax.random.normal(k1, (B, N, 3), dtype=jnp.float32)        # ignored
    xyz_embed = jax.random.normal(k2, (B, Cx, N), dtype=jnp.float32)
    features = jax.random.normal(k3, (B, Cf, N), dtype=jnp.float32)

    out = jax.block_until_ready(
        group_all(xyz, xyz_embed, None, None, features=features, use_xyz=True))
    ref = jnp.concatenate(
        [xyz_embed[:, :, None, :], features[:, :, None, :]], axis=1)
    assert out.shape == (B, Cx + Cf, 1, N), out.shape
    assert jnp.allclose(out, ref), "mismatch vs reference (small, use_xyz)"

    out_no_feat = jax.block_until_ready(
        group_all(xyz, xyz_embed, None, None, features=None))
    assert jnp.allclose(out_no_feat, xyz_embed[:, :, None, :])

    out_no_xyz = jax.block_until_ready(
        group_all(xyz, xyz_embed, None, None, features=features, use_xyz=False))
    assert jnp.allclose(out_no_xyz, features[:, :, None, :])

    # --- larger N (exercises batch blocking / >=2-step grid) -------------
    N2 = 2560
    xyz_embed2 = jax.random.normal(k4, (B, Cx, N2), dtype=jnp.float32)
    features2 = jax.random.normal(k5, (B, Cf, N2), dtype=jnp.float32)
    out2 = jax.block_until_ready(
        group_all(None, xyz_embed2, None, None, features=features2,
                  use_xyz=True))
    ref2 = jnp.concatenate(
        [xyz_embed2[:, :, None, :], features2[:, :, None, :]], axis=1)
    assert out2.shape == (B, Cx + Cf, 1, N2), out2.shape
    assert jnp.allclose(out2, ref2), "mismatch vs reference (tiled, use_xyz)"

    print("KERNEL_OK")
</pallas_src>

<mosaic_0001>
module attributes {stable_mosaic.version = 11 : i64} {
  func.func @_concat_kernel(%arg0: i32, %arg1: i32, %arg2: memref<1x3x16xf32, #tpu.memory_space<vmem>>, %arg3: memref<1x4x16xf32, #tpu.memory_space<vmem>>, %arg4: memref<1x7x16xf32, #tpu.memory_space<vmem>>) attributes {dimension_semantics = [#tpu.dimension_semantics<parallel>, #tpu.dimension_semantics<parallel>], iteration_bounds = array<i64: 2, 1>, scalar_prefetch = 0 : i64, scratch_operands = 0 : i64, tpu.core_type = #tpu.core_type<tc>, window_params = [{transform_indices = @transform_0, window_bounds = array<i64: 1, 3, 16>}, {transform_indices = @transform_1, window_bounds = array<i64: 1, 4, 16>}, {transform_indices = @transform_2, window_bounds = array<i64: 1, 7, 16>}]} {
    %c0 = arith.constant 0 : index
    %c0_0 = arith.constant 0 : index
    %c0_1 = arith.constant 0 : index
    %0 = vector.load %arg2[%c0, %c0_0, %c0_1] : memref<1x3x16xf32, #tpu.memory_space<vmem>>, vector<1x3x16xf32>
    %c0_2 = arith.constant 0 : index
    %c0_3 = arith.constant 0 : index
    %c0_4 = arith.constant 0 : index
    %1 = vector.load %arg4[%c0_2, %c0_3, %c0_4] : memref<1x7x16xf32, #tpu.memory_space<vmem>>, vector<1x3x16xf32>
    tpu.vector_store %arg4[%c0_2, %c0_3, %c0_4], %0 {strides = array<i32>} : memref<1x7x16xf32, #tpu.memory_space<vmem>>, vector<1x3x16xf32>,
    %c0_5 = arith.constant 0 : index
    %c0_6 = arith.constant 0 : index
    %c0_7 = arith.constant 0 : index
    %2 = vector.load %arg3[%c0_5, %c0_6, %c0_7] : memref<1x4x16xf32, #tpu.memory_space<vmem>>, vector<1x4x16xf32>
    %c0_8 = arith.constant 0 : index
    %c3 = arith.constant 3 : index
    %c0_9 = arith.constant 0 : index
    %3 = vector.load %arg4[%c0_8, %c3, %c0_9] : memref<1x7x16xf32, #tpu.memory_space<vmem>>, vector<1x4x16xf32>
    tpu.vector_store %arg4[%c0_8, %c3, %c0_9], %2 {strides = array<i32>} : memref<1x7x16xf32, #tpu.memory_space<vmem>>, vector<1x4x16xf32>,
    return
  }
  func.func @transform_0(%arg0: i32, %arg1: i32) -> (i32, i32, i32) {
    %c0_i32 = arith.constant 0 : i32
    %c0_i32_0 = arith.constant 0 : i32
    return %arg0, %c0_i32, %arg1 : i32, i32, i32
  }
  func.func @transform_1(%arg0: i32, %arg1: i32) -> (i32, i32, i32) {
    %c0_i32 = arith.constant 0 : i32
    %c0_i32_0 = arith.constant 0 : i32
    return %arg0, %c0_i32, %arg1 : i32, i32, i32
  }
  func.func @transform_2(%arg0: i32, %arg1: i32) -> (i32, i32, i32) {
    %c0_i32 = arith.constant 0 : i32
    %c0_i32_0 = arith.constant 0 : i32
    return %arg0, %c0_i32, %arg1 : i32, i32, i32
  }
}

</mosaic_0001>

<bundles_post_ra>
// kernel: tpu_custom_call.1
= control target key start
LH: loop header
LB: loop body
LE: loop exit
PB: predicated region body
PF: predicated region fallthrough
CT: control target
= control target key end

     0   :  { %s366_s9 = smov 0   ;;  %s368_s10 = smov 0   ;;  %s390_s0 = inlined_call_operand.vmem [shape: f32[2,3,16], index: 0, kind: input, shape index: {}]   ;;  %s391_s1 = inlined_call_operand.vmem [shape: f32[2,4,16], index: 1, kind: input, shape index: {}]   ;;  %s392_s2 = inlined_call_operand.vmem [shape: f32[2,7,16], index: 2, kind: output, shape index: {}]  }
   0x1   :  { %s370_s11 = smov 0  }
   0x2 LB: > { %s24_s12 = sadd.s32 1, %s345_s10  ;;  %p297_p0 = scmp.ge.s32.totalorder %s349_s11, 1  ;;  %s349_s11 = sphi %s370_s11, %s12_s11   ;;  %s345_s10 = sphi %s368_s10, %s394_s10   ;;  %s341_s9 = sphi %s366_s9, %s393_s9  }
   0x3   : > { %p26_p1 = scmp.ge.s32.totalorder %s24_s12, 2  ;;  %p144_p2 = scmp.lt.s32.totalorder %s349_s11, 3 }
   0x5   : > { %s396_s12 = smov (%p26_p1, %s24_s12), 0  ;;  %p145_p3 = pnand %p297_p0, %p144_p2 }
   0x6   : > { %p177_p4 = scmp.lt.s32.totalorder (!%p145_p3), %s341_s9, 1 }
   0x7   : > { %148 = sbr.rel (%p145_p3) target bundleno = 18 (0x12), region = 28 }
   0xc   : > { %s398_s9 = smov (!%p177_p4, %s341_s9), 1  ;;  %vm199_vm0 = vcmask 124928   ;;  %vm202_vm1 = vcmask 125952  }
   0xd   : > { %s298_s13 = sshll.u32 %s398_s9, 2  ;;  %s300_s14 = sshll.u32 %s398_s9, 3 }
   0xe   : > { %s183_s17 = scalar_lea.vmem %s390_s0, %s298_s13  ;;  %s197_s20 = scalar_lea.vmem %s392_s2, %s300_s14 }
   0xf   : > { %v198_v0 = vld [vmem:[%s183_s17] sm:$0x7]  ;;  %s190_s23 = scalar_lea.vmem %s391_s1, %s298_s13 }
  0x10   : > { %200 = vst.msk [vmem:[%s197_s20] sm:$0x7] %vm199_vm0, %v198_v0  ;;  %v201_v1 = vld [vmem:[%s190_s23] sm:$0xf] }
  0x11   : > { %203 = vst.msk [vmem:[%s197_s20 + $0x3] sm:$0xf] %vm202_vm1, %v201_v1 }
  0x12 PF: > { %s12_s11 = sadd.s32 1, %s349_s11   ;;  %s393_s9 = smov %s345_s10 }
  0x13   : > { %p9_p5 = scmp.ge.s32.totalorder %s12_s11, 4   ;;  %s394_s10 = smov %s396_s12 }
  0x15   :  { %11 = sbr.rel (!%p9_p5) target bundleno = 2 (0x2), region = 61 }

</bundles_post_ra>
